<compile_context>
chip_gen: v5e
topology: v5e:2x2
jax: 0.10.0
libtpu: 0.0.40
codegen_flags: <defaults>
</compile_context>

<pallas_src>
import functools

import jax
import jax.numpy as jnp
from jax.experimental import pallas as pl
from jax.experimental.pallas import tpu as pltpu


# ----------------------------------------------------------------------------
# Kernel: batched per-frame "encode_image".
#   (F*P, Dp) @ (Dp, D) bf16 patch-embed matmul (f32 accumulate) + bias + ReLU,
#   per-frame mean pool over the P patches, then (F, D) @ (D, Dout) projection.
# Grid iterates over blocks of F frames.
# ----------------------------------------------------------------------------
def _frames_encode_kernel(patches_ref, w1_ref, b1_ref, w2_ref, b2_ref, out_ref):
    # patches_ref: (F, P, Dp) bf16   w1: (Dp, D) bf16   b1: (1, D) f32
    # w2: (D, Dout) bf16             b2: (1, Dout) f32  out_ref: (F, Dout) f32
    f, p, dp = patches_ref.shape
    x = patches_ref[...].reshape(f * p, dp)                      # (F*P, Dp) bf16
    h = jnp.dot(x, w1_ref[...], preferred_element_type=jnp.float32)
    h = jnp.maximum(h + b1_ref[...], 0.0)                        # f32 bias + ReLU
    pooled = jnp.mean(h.reshape(f, p, -1), axis=1)               # (F, D) f32
    feat = jnp.dot(pooled.astype(w2_ref.dtype), w2_ref[...],
                   preferred_element_type=jnp.float32) + b2_ref[...]  # (F, Dout)
    out_ref[...] = feat


# ----------------------------------------------------------------------------
# Block sizing / VMEM budgeting.
# ----------------------------------------------------------------------------
def _round_up(n, m):
    return ((n + m - 1) // m) * m


def _block_live_vmem_bytes(f_blk, p, dp, d, dout):
    """Rough per-step VMEM working set (double-buffered I/O + f32 intermediate)."""
    dp_l = _round_up(dp, 128)                    # lane padding inside VMEM
    patches = 2 * f_blk * p * dp_l * 2           # bf16 patches, double-buffered
    inter = f_blk * p * d * 4                    # f32 hidden activations
    weights = 2 * ((dp_l * d + d * dout) * 2 + (d + dout) * 4)
    out = 2 * f_blk * dout * 4                   # f32 output, double-buffered
    return patches + inter + weights + out


def _vmem_caps():
    """(block working-set budget, vmem_limit_bytes) for the local TPU generation."""
    cap = 64 * 1024 * 1024                       # conservative default: v7x per-TC
    try:
        cap = int(pltpu.get_tpu_info().vmem_capacity_bytes)
    except Exception:
        pass
    block_budget = min(cap // 3, 40 * 1024 * 1024)   # ~21 MiB v7x, 40 MiB v5e/v6e
    vmem_limit = min(cap // 2, 64 * 1024 * 1024)
    return block_budget, vmem_limit


def _choose_frames_per_block(n_frames, p, dp, d, dout, block_budget_bytes):
    """Frames per grid step.

    Constraints / preferences (in order):
      * F divides N (no masked tail block).
      * F % 8 == 0 or F == N: the (F, Dout) *output* block's second-to-last dim
        must be 8-aligned unless it spans the full array dim. (The patches
        block's F is a leading dim and is unconstrained.)
      * VMEM working set under the per-generation budget.
      * >= 2 grid steps so the "parallel" frame axis shards across v7x's 2 TCs.
      * As large as possible with F*P <= ~2048 matmul rows (HBM-streaming sweet
        spot; amortizes per-grid-step overhead and gives the projection matmul
        a non-trivial M).
    """
    target_rows = 2048
    divisors = [f for f in range(1, n_frames + 1) if n_frames % f == 0]
    legal = [f for f in divisors if f % 8 == 0 or f == n_frames]
    fitting = [f for f in legal
               if _block_live_vmem_bytes(f, p, dp, d, dout) <= block_budget_bytes]
    if not fitting:
        fitting = [min(legal)]
    multi = [f for f in fitting if n_frames // f >= 2] or fitting
    within = [f for f in multi if f * p <= target_rows]
    return max(within) if within else min(multi)


def encode_frames(patches, w1, b1, w2, b2, *, frames_per_block, vmem_limit_bytes):
    """patches: (N, P, Dp) bf16 -> (N, Dout) f32 per-frame features."""
    n, p, dp = patches.shape
    d = w1.shape[1]
    dout = w2.shape[1]
    f_blk = frames_per_block
    assert n % f_blk == 0

    return pl.pallas_call(
        _frames_encode_kernel,
        out_shape=jax.ShapeDtypeStruct((n, dout), jnp.float32),
        grid_spec=pltpu.PrefetchScalarGridSpec(
            num_scalar_prefetch=0,
            grid=(n // f_blk,),
            in_specs=[
                # Dp is the full (unpadded) last dim -> legal full-extent block;
                # keeps the dominant HBM stream at its natural width.
                pl.BlockSpec((f_blk, p, dp), lambda i: (i, 0, 0)),
                # Grid-invariant operands: constant index_map -> fetched once.
                pl.BlockSpec((dp, d), lambda i: (0, 0)),
                pl.BlockSpec((1, d), lambda i: (0, 0)),
                pl.BlockSpec((d, dout), lambda i: (0, 0)),
                pl.BlockSpec((1, dout), lambda i: (0, 0)),
            ],
            out_specs=pl.BlockSpec((f_blk, dout), lambda i: (i, 0)),
        ),
        compiler_params=pltpu.CompilerParams(
            dimension_semantics=("parallel",),   # shard frame blocks across TCs
            vmem_limit_bytes=vmem_limit_bytes,
        ),
    )(patches, w1, b1, w2, b2)


# ----------------------------------------------------------------------------
# Glue: patchify NCHW frames, parameter init, forward.
# ----------------------------------------------------------------------------
def patchify(frames, patch):
    """frames: (N, C, H, W) -> (N, P, C*patch*patch). Runs in the input dtype."""
    # TODO(synk): review item 6 (fuse patchify into the kernel as shifted
    #             matmuls over (F, C, H, W) blocks) deferred — needs a Mosaic
    #             dump check for tile-boundary relayouts before committing.
    n, c, h, w = frames.shape
    gh, gw = h // patch, w // patch
    x = frames.reshape(n, c, gh, patch, gw, patch)
    x = x.transpose(0, 2, 4, 1, 3, 5)            # (N, gh, gw, C, p, p)
    return x.reshape(n, gh * gw, c * patch * patch)


def _pad_to(x, shape):
    pads = [(0, s - xs) for xs, s in zip(x.shape, shape)]
    if all(pd == (0, 0) for pd in pads):
        return x
    return jnp.pad(x, pads)


def init_params(key, patch_dim, embed_dim, out_dim):
    k1, k2, k3, k4 = jax.random.split(key, 4)
    w1 = jax.random.normal(k1, (patch_dim, embed_dim), jnp.float32) * 0.02
    b1 = jax.random.normal(k2, (1, embed_dim), jnp.float32) * 0.02
    w2 = jax.random.normal(k3, (embed_dim, out_dim), jnp.float32) * 0.02
    b2 = jax.random.normal(k4, (1, out_dim), jnp.float32) * 0.02
    return w1, b1, w2, b2


@functools.partial(jax.jit, static_argnames=("patch", "temporal_pooling"))
def video_encoder_forward(images, w1, b1, w2, b2, *, patch, temporal_pooling):
    # images: (B, T, C, H, W) float32  (torch video_info)
    b, t, c, h, w = images.shape
    n = b * t

    # Cast to the MXU-native compute dtype *before* the patchify relayout so the
    # dominant read+write pass over the frames moves 2-byte, not 4-byte, elems.
    # TODO(synk): torch casts to clip_model.dtype (typically fp16); bf16 is the
    #             TPU-native equivalent and the reference uses the same precision.
    frames = images.reshape(n, c, h, w).astype(jnp.bfloat16)
    patches = patchify(frames, patch)                            # (N, P, Dp) bf16
    _, p, dp = patches.shape
    d = w1.shape[1]
    dout = w2.shape[1]

    # Lane-align only the *small* dims (embed / out); the big patch stream keeps
    # its natural Dp. Zero padding of weight cols/rows is numerically exact.
    d_pad = _round_up(d, 128)
    dout_pad = _round_up(dout, 128)
    w1_p = _pad_to(w1, (dp, d_pad)).astype(jnp.bfloat16)
    b1_p = _pad_to(b1, (1, d_pad))                               # f32
    w2_p = _pad_to(w2, (d_pad, dout_pad)).astype(jnp.bfloat16)
    b2_p = _pad_to(b2, (1, dout_pad))                            # f32

    block_budget, vmem_limit = _vmem_caps()
    f_blk = _choose_frames_per_block(n, p, dp, d_pad, dout_pad, block_budget)
    frame_feats = encode_frames(patches, w1_p, b1_p, w2_p, b2_p,
                                frames_per_block=f_blk,
                                vmem_limit_bytes=vmem_limit)     # (N, Dout_pad) f32

    # torch: stack(...).to(torch.half); mean over T (accumulate upcast, return
    # half). The (N, Dout) stream is <2% of HBM traffic, so the half cast +
    # temporal mean stay plain jnp ops that XLA fuses (no extra kernel launch).
    image_features = frame_feats[:, :dout].reshape(b, t, dout).astype(jnp.float16)
    attention_format_features = image_features
    video_feature = jnp.mean(image_features.astype(jnp.float32),
                             axis=1).astype(jnp.float16)

    if temporal_pooling == "mean":
        return video_feature, None
    else:
        return video_feature, attention_format_features


# Pure-JAX reference with the same bf16 matmul inputs (for correctness check).
def _reference_forward(images, w1, b1, w2, b2, *, patch):
    b, t, c, h, w = images.shape
    frames = images.reshape(b * t, c, h, w).astype(jnp.bfloat16)
    patches = patchify(frames, patch)
    hdd = jnp.einsum("npk,kd->npd", patches, w1.astype(jnp.bfloat16),
                     preferred_element_type=jnp.float32) + b1
    hdd = jnp.maximum(hdd, 0.0)
    pooled = jnp.mean(hdd, axis=1)                               # (N, D) f32
    feat = jnp.dot(pooled.astype(jnp.bfloat16), w2.astype(jnp.bfloat16),
                   preferred_element_type=jnp.float32) + b2      # (N, Dout) f32
    image_features = feat.reshape(b, t, -1).astype(jnp.float16)
    video_feature = jnp.mean(image_features.astype(jnp.float32),
                             axis=1).astype(jnp.float16)
    return video_feature, image_features


if __name__ == "__main__":
    # batch=2 videos, T=16 frames, 3-channel 32x32 images, patch=8
    # -> P=16 patches/frame, Dp=192 (unpadded), embed dim 128, out dim 96.
    # The block heuristic picks F_blk=16 -> grid=(2,), so both v7x TCs get work.
    B, T, C, H, W = 2, 16, 3, 32, 32
    PATCH = 8
    EMBED_DIM, OUT_DIM = 128, 96
    PATCH_DIM = C * PATCH * PATCH

    key = jax.random.PRNGKey(0)
    k_img, k_par = jax.random.split(key)
    images = jax.random.normal(k_img, (B, T, C, H, W), jnp.float32)
    w1, b1, w2, b2 = init_params(k_par, PATCH_DIM, EMBED_DIM, OUT_DIM)

    video_feature, attn_feats = video_encoder_forward(
        images, w1, b1, w2, b2, patch=PATCH, temporal_pooling="mean")
    video_feature = jax.block_until_ready(video_feature)

    assert video_feature.shape == (B, OUT_DIM)
    assert video_feature.dtype == jnp.float16
    assert attn_feats is None

    # Non-mean pooling branch.
    vf2, attn2 = video_encoder_forward(
        images, w1, b1, w2, b2, patch=PATCH, temporal_pooling="attention")
    vf2 = jax.block_until_ready(vf2)
    attn2 = jax.block_until_ready(attn2)
    assert attn2.shape == (B, T, OUT_DIM) and attn2.dtype == jnp.float16

    # Numerical check against a plain-JAX reference (same bf16 matmul inputs).
    ref_vf, ref_attn = _reference_forward(images, w1, b1, w2, b2, patch=PATCH)
    ref_vf = jax.block_until_ready(ref_vf)
    assert jnp.allclose(video_feature.astype(jnp.float32),
                        ref_vf.astype(jnp.float32), atol=1e-2, rtol=1e-1)
    assert jnp.allclose(attn2.astype(jnp.float32),
                        ref_attn.astype(jnp.float32), atol=1e-2, rtol=1e-1)

    print("KERNEL_OK")
</pallas_src>

<mosaic_0001>
module attributes {stable_mosaic.version = 11 : i64} {
  func.func @_frames_encode_kernel(%arg0: i32, %arg1: memref<16x16x192xbf16, #tpu.memory_space<vmem>>, %arg2: memref<192x128xbf16, #tpu.memory_space<vmem>>, %arg3: memref<1x128xf32, #tpu.memory_space<vmem>>, %arg4: memref<128x128xbf16, #tpu.memory_space<vmem>>, %arg5: memref<1x128xf32, #tpu.memory_space<vmem>>, %arg6: memref<16x128xf32, #tpu.memory_space<vmem>>) attributes {dimension_semantics = [#tpu.dimension_semantics<parallel>], iteration_bounds = array<i64: 2>, scalar_prefetch = 0 : i64, scratch_operands = 0 : i64, tpu.core_type = #tpu.core_type<tc>, window_params = [{transform_indices = @transform_0, window_bounds = array<i64: 16, 16, 192>}, {pipeline_mode = #tpu.pipeline_mode<synchronous>, transform_indices = @transform_1, window_bounds = array<i64: 192, 128>}, {pipeline_mode = #tpu.pipeline_mode<synchronous>, transform_indices = @transform_2, window_bounds = array<i64: 1, 128>}, {pipeline_mode = #tpu.pipeline_mode<synchronous>, transform_indices = @transform_3, window_bounds = array<i64: 128, 128>}, {pipeline_mode = #tpu.pipeline_mode<synchronous>, transform_indices = @transform_4, window_bounds = array<i64: 1, 128>}, {transform_indices = @transform_5, window_bounds = array<i64: 16, 128>}]} {
    %c0 = arith.constant 0 : index
    %c0_0 = arith.constant 0 : index
    %c0_1 = arith.constant 0 : index
    %0 = vector.load %arg1[%c0, %c0_0, %c0_1] : memref<16x16x192xbf16, #tpu.memory_space<vmem>>, vector<16x16x192xbf16>
    %1 = vector.shape_cast %0 : vector<16x16x192xbf16> to vector<256x192xbf16>
    %c0_2 = arith.constant 0 : index
    %c0_3 = arith.constant 0 : index
    %2 = vector.load %arg2[%c0_2, %c0_3] : memref<192x128xbf16, #tpu.memory_space<vmem>>, vector<192x128xbf16>
    %cst = arith.constant dense<0.000000e+00> : vector<256x128xf32>
    %3 = tpu.matmul %1, %2, %cst {dimension_numbers = #tpu.dot_dimension_numbers<[1], [0], [0], [1], [0, 0, 1, 1], [], []>} : vector<256x192xbf16>, vector<192x128xbf16>, vector<256x128xf32> -> vector<256x128xf32>
    %c0_4 = arith.constant 0 : index
    %c0_5 = arith.constant 0 : index
    %4 = vector.load %arg3[%c0_4, %c0_5] : memref<1x128xf32, #tpu.memory_space<vmem>>, vector<1x128xf32>
    %5 = vector.broadcast %4 : vector<1x128xf32> to vector<256x128xf32>
    %6 = arith.addf %3, %5 : vector<256x128xf32>
    %cst_6 = arith.constant 0.000000e+00 : f32
    %7 = vector.broadcast %cst_6 : f32 to vector<256x128xf32>
    %8 = arith.maximumf %6, %7 : vector<256x128xf32>
    %9 = vector.shape_cast %8 : vector<256x128xf32> to vector<16x16x128xf32>
    %cst_7 = arith.constant dense<0.000000e+00> : vector<16x128xf32>
    %10 = vector.multi_reduction <add>, %9, %cst_7 [1] : vector<16x16x128xf32> to vector<16x128xf32>
    %cst_8 = arith.constant 1.600000e+01 : f32
    %11 = vector.broadcast %cst_8 : f32 to vector<16x128xf32>
    %12 = arith.divf %10, %11 : vector<16x128xf32>
    %13 = arith.truncf %12 : vector<16x128xf32> to vector<16x128xbf16>
    %c0_9 = arith.constant 0 : index
    %c0_10 = arith.constant 0 : index
    %14 = vector.load %arg4[%c0_9, %c0_10] : memref<128x128xbf16, #tpu.memory_space<vmem>>, vector<128x128xbf16>
    %cst_11 = arith.constant dense<0.000000e+00> : vector<16x128xf32>
    %15 = tpu.matmul %13, %14, %cst_11 {dimension_numbers = #tpu.dot_dimension_numbers<[1], [0], [0], [1], [0, 0, 1, 1], [], []>} : vector<16x128xbf16>, vector<128x128xbf16>, vector<16x128xf32> -> vector<16x128xf32>
    %c0_12 = arith.constant 0 : index
    %c0_13 = arith.constant 0 : index
    %16 = vector.load %arg5[%c0_12, %c0_13] : memref<1x128xf32, #tpu.memory_space<vmem>>, vector<1x128xf32>
    %17 = vector.broadcast %16 : vector<1x128xf32> to vector<16x128xf32>
    %18 = arith.addf %15, %17 : vector<16x128xf32>
    %c0_14 = arith.constant 0 : index
    %c0_15 = arith.constant 0 : index
    %19 = vector.load %arg6[%c0_14, %c0_15] : memref<16x128xf32, #tpu.memory_space<vmem>>, vector<16x128xf32>
    tpu.vector_store %arg6[%c0_14, %c0_15], %18 {strides = array<i32>} : memref<16x128xf32, #tpu.memory_space<vmem>>, vector<16x128xf32>,
    return
  }
  func.func @transform_0(%arg0: i32) -> (i32, i32, i32) {
    %c0_i32 = arith.constant 0 : i32
    %c0_i32_0 = arith.constant 0 : i32
    %c0_i32_1 = arith.constant 0 : i32
    return %arg0, %c0_i32, %c0_i32_0 : i32, i32, i32
  }
  func.func @transform_1(%arg0: i32) -> (i32, i32) {
    %c0_i32 = arith.constant 0 : i32
    %c0_i32_0 = arith.constant 0 : i32
    %c0_i32_1 = arith.constant 0 : i32
    return %c0_i32, %c0_i32_0 : i32, i32
  }
  func.func @transform_2(%arg0: i32) -> (i32, i32) {
    %c0_i32 = arith.constant 0 : i32
    %c0_i32_0 = arith.constant 0 : i32
    %c0_i32_1 = arith.constant 0 : i32
    return %c0_i32, %c0_i32_0 : i32, i32
  }
  func.func @transform_3(%arg0: i32) -> (i32, i32) {
    %c0_i32 = arith.constant 0 : i32
    %c0_i32_0 = arith.constant 0 : i32
    %c0_i32_1 = arith.constant 0 : i32
    return %c0_i32, %c0_i32_0 : i32, i32
  }
  func.func @transform_4(%arg0: i32) -> (i32, i32) {
    %c0_i32 = arith.constant 0 : i32
    %c0_i32_0 = arith.constant 0 : i32
    %c0_i32_1 = arith.constant 0 : i32
    return %c0_i32, %c0_i32_0 : i32, i32
  }
  func.func @transform_5(%arg0: i32) -> (i32, i32) {
    %c0_i32 = arith.constant 0 : i32
    %c0_i32_0 = arith.constant 0 : i32
    return %arg0, %c0_i32 : i32, i32
  }
}

</mosaic_0001>

<bundles_post_ra>
// kernel: video_encoder_forward.1
= control target key start
LH: loop header
LB: loop body
LE: loop exit
PB: predicated region body
PF: predicated region fallthrough
CT: control target
= control target key end

     0   :  { %s1466_s18 = smov 0   ;;  %s1730_s0 = inlined_call_operand.vmem [shape: bf16[32,16,192], index: 0, kind: input, shape index: {}]   ;;  %s1731_s1 = inlined_call_operand.vmem [shape: bf16[192,128], index: 1, kind: input, shape index: {}]   ;;  %s1732_s2 = inlined_call_operand.vmem [shape: f32[1,128], index: 2, kind: input, shape index: {}]   ;;  %s1733_s3 = inlined_call_operand.vmem [shape: bf16[128,128], index: 3, kind: input, shape index: {}]   ;;  %s1734_s4 = inlined_call_operand.vmem [shape: f32[1,128], index: 4, kind: input, shape index: {}]   ;;  %s1735_s5 = inlined_call_operand.vmem [shape: f32[32,128], index: 5, kind: output, shape index: {}]  }
   0x1 LB: > { %s1113_s19 = sadd.s32 4294967295, %s1433_s18   ;;  %p1117_p0 = scmp.ge.s32.totalorder %s1433_s18, 1  ;;  %s1433_s18 = sphi %s1466_s18, %s15_s18  }
   0x2   : > { %p189_p1 = scmp.lt.s32.totalorder %s1433_s18, 3 }
   0x4   : > { %p190_p2 = pnand %p1117_p0, %p189_p1 }
   0x5   : > { %s1118_s24 = sshll.u32 (!%p190_p2), %s1113_s19, 4  ;;  %s1121_s21 = sshll.u32 (!%p190_p2), %s1113_s19, 1 }
   0x6   : > { %193 = sbr.rel (%p190_p2) target bundleno = 468 (0x1d4), region = 40  ;;  %p219_p3 = scmp.lt.s32.totalorder (!%p190_p2), %s1118_s24, 31 }
   0x7   : > { %p226_p4 = scmp.lt.s32.totalorder (!%p190_p2), %s1121_s21, 3 }
   0xb   : > { %v1389_v0 = vld [vmem:[%s1731_s1 + $0x38] sm:$0xff]  ;;  %v1388_v2 = vld [vmem:[%s1731_s1 + $0x30] sm:$0xff]  ;;  %s1737_s24 = smov (!%p219_p3, %s1118_s24), 31  ;;  %v1387_v4 = vld [vmem:[%s1731_s1 + $0x28] sm:$0xff]  ;;  %vm508_vm0 = vcmask 523264   ;;  %vm970_vm2 = vcmask 1041409  }
   0xc   : > { %v1393_v1 = vld [vmem:[%s1731_s1 + $0x58] sm:$0xff]  ;;  %557 = vmatpush.bf16.msra.mxu0 %v1389_v0  ;;  %1402 = vmatpush.bf16.msra.mxu3 %v1389_v0  ;;  %v1392_v3 = vld [vmem:[%s1731_s1 + $0x50] sm:$0xff]  ;;  %s1349_s29 = sshll.u32 %s1737_s24, 4  ;;  %v1391_v5 = vld [vmem:[%s1731_s1 + $0x48] sm:$0xff]  ;;  %vm972_vm3 = vcmask 1042434   ;;  %vm974_vm4 = vcmask 1043459  }
   0xd   : > { %650 = vmatpush.bf16.msra.mxu1 %v1393_v1  ;;  %1410 = vmatpush.bf16.msra.mxu2 %v1393_v1  ;;  %s1497_s11 = scalar_lea.vmem %s1730_s0, %s1349_s29  ;;  %v1386_v6 = vld [vmem:[%s1731_s1 + $0x20] sm:$0xff]  ;;  %v1385_v13 = vld [vmem:[%s1731_s1 + $0x18] sm:$0xff]  ;;  %v1384_v15 = vld [vmem:[%s1731_s1 + $0x10] sm:$0xff]  ;;  %vm976_vm5 = vcmask 1044484   ;;  %vm978_vm6 = vcmask 1045509   ;;  %vm980_vm7 = vcmask 1046534  }
   0xe   : > { %v1390_v7 = vld [vmem:[%s1731_s1 + $0x40] sm:$0xff]  ;;  %v1127_v9 = vld [vmem:[%s1497_s11 + $0x8] sm:$0xf0]  ;;  %v1368_v10 = vld [vmem:[%s1497_s11 + $0x94] sm:$0xf]  ;;  %vm982_vm8 = vcmask 1047559  }
   0xf   : > { %v1350_v8 = vld [vmem:[%s1497_s11 + $0x4] sm:$0xf]  ;;  %v1199_v11 = vld [vmem:[%s1497_s11 + $0x98] sm:$0xf0]  ;;  %v1383_v16 = vld [vmem:[%s1731_s1 + $0x8] sm:$0xff]  ;;  %s1739_s21 = smov (!%p226_p4, %s1121_s21), 3 }
  0x10   : > { %558 = vmatpush.bf16.msra.mxu0 %v1388_v2  ;;  %1403 = vmatpush.bf16.msra.mxu3 %v1388_v2  ;;  %v1130_v12 = vor.u32 %v1350_v8, %v1127_v9  ;;  %v1202_v14 = vor.u32 %v1368_v10, %v1199_v11  ;;  %v1382_v17 = vld [vmem:[%s1731_s1] sm:$0xff]  ;;  %v1351_v19 = vld [vmem:[%s1497_s11 + $0x4] sm:$0xf0]  ;;  %v1352_v22 = vld [vmem:[%s1497_s11 + $0x14] sm:$0xf]  ;;  %s1122_s22 = sshll.u32 %s1739_s21, 3 }
  0x11   : > { %651 = vmatpush.bf16.msra.mxu1 %v1392_v3  ;;  %1411 = vmatpush.bf16.msra.mxu2 %v1392_v3  ;;  %v1125_v18 = vld [vmem:[%s1497_s11] sm:$0xf]  ;;  %v1367_v21 = vld [vmem:[%s1497_s11 + $0x84] sm:$0xf0]  ;;  %v1135_v23 = vld [vmem:[%s1497_s11 + $0x18] sm:$0xf0]  ;;  %s229_s27 = scalar_lea.vmem %s1735_s5, %s1122_s22 }
  0x12   : > { %v1189_v20 = vld [vmem:[%s1497_s11 + $0x80] sm:$0xf]  ;;  %v1370_v24 = vld [vmem:[%s1497_s11 + $0xa4] sm:$0xf]  ;;  %v1207_v25 = vld [vmem:[%s1497_s11 + $0xa8] sm:$0xf0]  ;;  %v1126_v26 = vor.u32 %v1351_v19, %v1125_v18  ;;  %v1138_v28 = vor.u32 %v1352_v22, %v1135_v23 }
  0x13   : > { %v1190_v27 = vor.u32 %v1367_v21, %v1189_v20  ;;  %v1210_v29 = vor.u32 %v1370_v24, %v1207_v25  ;;  %v1133_v30 = vld [vmem:[%s1497_s11 + $0x10] sm:$0xf]  ;;  %v1353_v31 = vld [vmem:[%s1497_s11 + $0x14] sm:$0xf0]  ;;  %v1354_v34 = vld [vmem:[%s1497_s11 + $0x24] sm:$0xf] }
  0x14   : > { %559 = vmatpush.bf16.msra.mxu0 %v1387_v4  ;;  %1404 = vmatpush.bf16.msra.mxu3 %v1387_v4  ;;  %v1197_v32 = vld [vmem:[%s1497_s11 + $0x90] sm:$0xf]  ;;  %v1369_v33 = vld [vmem:[%s1497_s11 + $0x94] sm:$0xf0]  ;;  %v1143_v35 = vld [vmem:[%s1497_s11 + $0x28] sm:$0xf0]  ;;  %v1134_v38 = vor.u32 %v1353_v31, %v1133_v30 }
  0x15   : > { %652 = vmatpush.bf16.msra.mxu1 %v1391_v5  ;;  %1412 = vmatpush.bf16.msra.mxu2 %v1391_v5  ;;  %v1372_v36 = vld [vmem:[%s1497_s11 + $0xb4] sm:$0xf]  ;;  %v1215_v37 = vld [vmem:[%s1497_s11 + $0xb8] sm:$0xf0]  ;;  %v1198_v39 = vor.u32 %v1369_v33, %v1197_v32  ;;  %v1146_v40 = vor.u32 %v1354_v34, %v1143_v35  ;;  %v1141_v42 = vld [vmem:[%s1497_s11 + $0x20] sm:$0xf] }
  0x16   : > { %v1218_v41 = vor.u32 %v1372_v36, %v1215_v37  ;;  %v1355_v43 = vld [vmem:[%s1497_s11 + $0x24] sm:$0xf0]  ;;  %v1205_v44 = vld [vmem:[%s1497_s11 + $0xa0] sm:$0xf]  ;;  %v1356_v46 = vld [vmem:[%s1497_s11 + $0x34] sm:$0xf] }
  0x17   : > { %v1371_v45 = vld [vmem:[%s1497_s11 + $0xa4] sm:$0xf0]  ;;  %v1151_v47 = vld [vmem:[%s1497_s11 + $0x38] sm:$0xf0]  ;;  %v1374_v48 = vld [vmem:[%s1497_s11 + $0xc4] sm:$0xf]  ;;  %v1142_v50 = vor.u32 %v1355_v43, %v1141_v42 }
  0x18   : > { %560 = vmatpush.bf16.msra.mxu0 %v1386_v6  ;;  %1405 = vmatpush.bf16.msra.mxu3 %v1386_v6  ;;  %v1223_v49 = vld [vmem:[%s1497_s11 + $0xc8] sm:$0xf0]  ;;  %v1206_v51 = vor.u32 %v1371_v45, %v1205_v44  ;;  %v1154_v52 = vor.u32 %v1356_v46, %v1151_v47  ;;  %v1149_v54 = vld [vmem:[%s1497_s11 + $0x30] sm:$0xf]  ;;  %v1357_v55 = vld [vmem:[%s1497_s11 + $0x34] sm:$0xf0] }
  0x19   : > { %653 = vmatpush.bf16.msra.mxu1 %v1390_v7  ;;  %1413 = vmatpush.bf16.msra.mxu2 %v1390_v7  ;;  %v1226_v53 = vor.u32 %v1374_v48, %v1223_v49  ;;  %v1213_v56 = vld [vmem:[%s1497_s11 + $0xb0] sm:$0xf]  ;;  %v1373_v57 = vld [vmem:[%s1497_s11 + $0xb4] sm:$0xf0]  ;;  %v1358_v58 = vld [vmem:[%s1497_s11 + $0x44] sm:$0xf]  ;;  %v1150_v62 = vor.u32 %v1357_v55, %v1149_v54 }
  0x1a   : > { %v1159_v59 = vld [vmem:[%s1497_s11 + $0x48] sm:$0xf0]  ;;  %v1376_v60 = vld [vmem:[%s1497_s11 + $0xd4] sm:$0xf]  ;;  %v1231_v61 = vld [vmem:[%s1497_s11 + $0xd8] sm:$0xf0]  ;;  %v1214_v63 = vor.u32 %v1373_v57, %v1213_v56 }
  0x1b   : > { %v1162_v0 = vor.u32 %v1358_v58, %v1159_v59  ;;  %v1234_v1 = vor.u32 %v1376_v60, %v1231_v61  ;;  %v1157_v2 = vld [vmem:[%s1497_s11 + $0x40] sm:$0xf]  ;;  %v1359_v3 = vld [vmem:[%s1497_s11 + $0x44] sm:$0xf0]  ;;  %v1360_v6 = vld [vmem:[%s1497_s11 + $0x54] sm:$0xf] }
  0x1c   : > { %1299 = vmatmul.msk.bf16.vlgmr.msra.gmra.mxu1 %vm508_vm0, %v1130_v12  ;;  %561 = vmatpush.bf16.msra.mxu0 %v1385_v13  ;;  %v1221_v4 = vld [vmem:[%s1497_s11 + $0xc0] sm:$0xf]  ;;  %v1375_v5 = vld [vmem:[%s1497_s11 + $0xc4] sm:$0xf0]  ;;  %v1167_v7 = vld [vmem:[%s1497_s11 + $0x58] sm:$0xf0]  ;;  %v1158_v10 = vor.u32 %v1359_v3, %v1157_v2 }
  0x1d   : > { %1406 = vmatpush.bf16.msra.mxu3 %v1385_v13  ;;  %1308 = vmatmul.msk.bf16.vlgmr.msra.gmra.mxu2 %vm508_vm0, %v1202_v14  ;;  %v1378_v8 = vld [vmem:[%s1497_s11 + $0xe4] sm:$0xf]  ;;  %v1239_v9 = vld [vmem:[%s1497_s11 + $0xe8] sm:$0xf0]  ;;  %v1222_v11 = vor.u32 %v1375_v5, %v1221_v4  ;;  %v1170_v12 = vor.u32 %v1360_v6, %v1167_v7  ;;  %v1165_v14 = vld [vmem:[%s1497_s11 + $0x50] sm:$0xf] }
  0x1e   : > { %v1242_v13 = vor.u32 %v1378_v8, %v1239_v9  ;;  %v1362_v18 = vld [vmem:[%s1497_s11 + $0x64] sm:$0xf]  ;;  %v1175_v19 = vld [vmem:[%s1497_s11 + $0x68] sm:$0xf0]  ;;  %v1380_v20 = vld [vmem:[%s1497_s11 + $0xf4] sm:$0xf] }
  0x1f   : > { %v1247_v21 = vld [vmem:[%s1497_s11 + $0xf8] sm:$0xf0]  ;;  %v1178_v24 = vor.u32 %v1362_v18, %v1175_v19  ;;  %v1364_v30 = vld [vmem:[%s1497_s11 + $0x74] sm:$0xf]  ;;  %v1181_v35 = vld [vmem:[%s1497_s11 + $0x70] sm:$0xf] }
  0x20   : > { %562 = vmatpush.bf16.msra.mxu0 %v1384_v15  ;;  %v1250_v25 = vor.u32 %v1380_v20, %v1247_v21  ;;  %v1183_v31 = vld [vmem:[%s1497_s11 + $0x78] sm:$0xf0]  ;;  %v1365_v36 = vld [vmem:[%s1497_s11 + $0x74] sm:$0xf0]  ;;  %v1245_v37 = vld [vmem:[%s1497_s11 + $0xf0] sm:$0xf] }
  0x21   : > { %1407 = vmatpush.bf16.msra.mxu3 %v1384_v15  ;;  %v1361_v15 = vld [vmem:[%s1497_s11 + $0x54] sm:$0xf0]  ;;  %v1186_v34 = vor.u32 %v1364_v30, %v1183_v31  ;;  %v1600_v46 = vld [vmem:[%s1732_s2] ss:$0 sm:$0xff]  ;;  %v1435_v60 = vmov 16.0  }
  0x22   : > { %v1166_v22 = vor.u32 %v1361_v15, %v1165_v14  ;;  %1425 = vrcp.f32 %v1435_v60  ;;  %v1401_v30 = vld [vmem:[%s1733_s3 + $0x38] sm:$0xff] }
  0x23   : > { %1041 = vmatpush.bf16.msrb.mxu2 %v1401_v30 }
  0x24   : > { %563 = vmatpush.bf16.msra.mxu0 %v1383_v16 }
  0x25   : > { %1408 = vmatpush.bf16.msra.mxu3 %v1383_v16  ;;  %v1229_v16 = vld [vmem:[%s1497_s11 + $0xd0] sm:$0xf] }
  0x28   : > { %564 = vmatpush.bf16.msra.mxu0 %v1382_v17  ;;  %v1426_v3 = vpop.eup %1425 }
  0x29   : > { %1409 = vmatpush.bf16.msra.mxu3 %v1382_v17  ;;  %v1377_v17 = vld [vmem:[%s1497_s11 + $0xd4] sm:$0xf0]  ;;  %v880_v7 = vmul.f32 16.0, %v1426_v3  ;;  %vm884_vm1 = vweird.f32 %v1426_v3 }
  0x2a   : > { %v1230_v23 = vor.u32 %v1377_v17, %v1229_v16 }
  0x2b   : > { %565 = vmatmul.bf16.vlgmr.msra.gmra.mxu0 %v1126_v26  ;;  %v1173_v26 = vld [vmem:[%s1497_s11 + $0x60] sm:$0xf]  ;;  %v881_v14 = vsub.f32 1.0, %v880_v7  ;;  %v1400_v7 = vld [vmem:[%s1733_s3 + $0x30] sm:$0xff] }
  0x2c   : > { %605 = vmatmul.bf16.vlgmr.msra.gmra.mxu3 %v1190_v27  ;;  %1300 = vmatmul.msk.bf16.gmra.mxu1 %vm508_vm0, %v1138_v28  ;;  %v1363_v27 = vld [vmem:[%s1497_s11 + $0x64] sm:$0xf0]  ;;  %v1237_v28 = vld [vmem:[%s1497_s11 + $0xe0] sm:$0xf] }
  0x2d   : > { %1309 = vmatmul.msk.bf16.gmra.mxu2 %vm508_vm0, %v1210_v29  ;;  %v1379_v29 = vld [vmem:[%s1497_s11 + $0xe4] sm:$0xf0]  ;;  %v1174_v32 = vor.u32 %v1363_v27, %v1173_v26  ;;  %v882_v21 = vmul.f32 %v1426_v3, %v881_v14 }
  0x2e   : > { %v1238_v33 = vor.u32 %v1379_v29, %v1237_v28  ;;  %1042 = vmatpush.bf16.msrb.mxu2 %v1400_v7 }
  0x2f   : > { %v883_v31 = vadd.f32 %v1426_v3, %v882_v21 }
  0x3b   : > { %570 = vmatmul.bf16.gmra.mxu0 %v1134_v38  ;;  %v1381_v38 = vld [vmem:[%s1497_s11 + $0xf4] sm:$0xf0] }
  0x3c   : > { %610 = vmatmul.bf16.gmra.mxu3 %v1198_v39  ;;  %1301 = vmatmul.msk.bf16.gmra.mxu1 %vm508_vm0, %v1146_v40  ;;  %v1366_v39 = vld [vmem:[%s1497_s11 + $0x84] sm:$0xf]  ;;  %v1191_v40 = vld [vmem:[%s1497_s11 + $0x88] sm:$0xf0]  ;;  %v1246_v42 = vor.u32 %v1381_v38, %v1245_v37 }
  0x3d   : > { %1310 = vmatmul.msk.bf16.gmra.mxu2 %vm508_vm0, %v1218_v41  ;;  %v1182_v41 = vor.u32 %v1365_v36, %v1181_v35  ;;  %v1194_v43 = vor.u32 %v1366_v39, %v1191_v40  ;;  %v1616_v39 = vsel %vm884_vm1, %v1426_v3, %v883_v31 }
  0x4b   : > { %575 = vmatmul.bf16.gmra.mxu0 %v1142_v50 }
  0x4c   : > { %615 = vmatmul.bf16.gmra.mxu3 %v1206_v51  ;;  %1302 = vmatmul.msk.bf16.gmra.mxu1 %vm508_vm0, %v1154_v52 }
  0x4d   : > { %1311 = vmatmul.msk.bf16.gmra.mxu2 %vm508_vm0, %v1226_v53 }
  0x5b   : > { %580 = vmatmul.bf16.gmra.mxu0 %v1150_v62 }
  0x5c   : > { %620 = vmatmul.bf16.gmra.mxu3 %v1214_v63  ;;  %1303 = vmatmul.msk.bf16.gmra.mxu1 %vm508_vm0, %v1162_v0 }
  0x5d   : > { %1312 = vmatmul.msk.bf16.gmra.mxu2 %vm508_vm0, %v1234_v1 }
  0x6b   : > { %585 = vmatmul.bf16.gmra.mxu0 %v1158_v10 }
  0x6c   : > { %625 = vmatmul.bf16.gmra.mxu3 %v1222_v11  ;;  %1304 = vmatmul.msk.bf16.gmra.mxu1 %vm508_vm0, %v1170_v12 }
  0x6d   : > { %1313 = vmatmul.msk.bf16.gmra.mxu2 %vm508_vm0, %v1242_v13 }
  0x7b   : > { %590 = vmatmul.bf16.gmra.mxu0 %v1166_v22 }
  0x7c   : > { %630 = vmatmul.bf16.gmra.mxu3 %v1230_v23  ;;  %1305 = vmatmul.msk.bf16.gmra.mxu1 %vm508_vm0, %v1178_v24 }
  0x7d   : > { %1314 = vmatmul.msk.bf16.gmra.mxu2 %vm508_vm0, %v1250_v25 }
  0x8b   : > { %595 = vmatmul.bf16.gmra.mxu0 %v1174_v32 }
  0x8c   : > { %635 = vmatmul.bf16.gmra.mxu3 %v1238_v33  ;;  %1306 = vmatmul.msk.bf16.gmra.mxu1 %vm508_vm0, %v1186_v34 }
  0x99   : > { %v655_v44 = vpop.f32.mrf.mxu1 }
  0x9b   : > { %600 = vmatmul.bf16.gmra.mxu0 %v1182_v41 }
  0x9c   : > { %640 = vmatmul.bf16.gmra.mxu3 %v1246_v42  ;;  %1307 = vmatmul.msk.bf16.gmra.mxu1 %vm508_vm0, %v1194_v43 }
  0xa0   : > { %v700_v47 = vpop.f32.mrf.mxu2 }
  0xa1   : > { %v657_v45 = vpop.f32.mrf.mxu1 }
  0xa8   : > { %v566_v48 = vpop.f32.mrf.mxu0  ;;  %v702_v56 = vpop.f32.mrf.mxu2 }
  0xa9   : > { %v567_v49 = vadd.f32 %v1600_v46, %v566_v48  ;;  %v660_v50 = vpop.f32.mrf.mxu1 }
  0xab   : > { %v656_v51 = vadd.f32 %v655_v44, %v567_v49 }
  0xad   : > { %v735_v58 = vmax.f32 %v656_v51, 0.0 }
  0xaf   : > { %v1603_v52 = vpop.f32.mrf.mxu3 }
  0xb0   : > { %v568_v53 = vpop.f32.mrf.mxu0  ;;  %v705_v5 = vpop.f32.mrf.mxu2 }
  0xb1   : > { %v569_v54 = vadd.f32 %v1600_v46, %v568_v53  ;;  %v662_v55 = vpop.f32.mrf.mxu1 }
  0xb3   : > { %v658_v57 = vadd.f32 %v657_v45, %v569_v54 }
  0xb5   : > { %v736_v59 = vmax.f32 %v658_v57, 0.0 }
  0xb7   : > { %v767_v61 = vadd.f32 %v736_v59, %v735_v58  ;;  %v1606_v62 = vpop.f32.mrf.mxu3 }
  0xb8   : > { %v571_v63 = vpop.f32.mrf.mxu0  ;;  %v707_v20 = vpop.f32.mrf.mxu2 }
  0xb9   : > { %v768_v0 = vrot.slane %v767_v61, 4  ;;  %v572_v1 = vadd.f32 %v1600_v46, %v571_v63  ;;  %v665_v2 = vpop.f32.mrf.mxu1 }
  0xbb   : > { %v661_v4 = vadd.f32 %v660_v50, %v572_v1  ;;  %v769_v6 = vadd.f32 %v768_v0, %v767_v61 }
  0xbd   : > { %v770_v11 = vrot.slane %v769_v6, 2  ;;  %v737_v18 = vmax.f32 %v661_v4, 0.0 }
  0xbf   : > { %v611_v8 = vpop.f32.mrf.mxu3  ;;  %v771_v17 = vadd.f32 %v770_v11, %v769_v6 }
  0xc0   : > { %v612_v9 = vadd.f32 %v1600_v46, %v611_v8  ;;  %v573_v10 = vpop.f32.mrf.mxu0  ;;  %v710_v43 = vpop.f32.mrf.mxu2 }
  0xc1   : > { %v574_v12 = vadd.f32 %v1600_v46, %v573_v10  ;;  %v667_v13 = vpop.f32.mrf.mxu1  ;;  %v772_v26 = vrot.slane %v771_v17, 1 }
  0xc2   : > { %v701_v15 = vadd.f32 %v700_v47, %v612_v9 }
  0xc3   : > { %v663_v16 = vadd.f32 %v662_v55, %v574_v12  ;;  %v773_v37 = vadd.f32 %v772_v26, %v771_v17 }
  0xc4   : > { %v753_v35 = vmax.f32 %v701_v15, 0.0 }
  0xc5   : > { %v738_v19 = vmax.f32 %v663_v16, 0.0  ;;  %v886_v47 = vmul.f32 %v1616_v39, %v773_v37  ;;  %v1399_v37 = vld [vmem:[%s1733_s3 + $0x28] sm:$0xff] }
  0xc6   : > { %1043 = vmatpush.bf16.msrb.mxu2 %v1399_v37 }
  0xc7   : > { %v774_v22 = vadd.f32 %v738_v19, %v737_v18  ;;  %v613_v23 = vpop.f32.mrf.mxu3  ;;  %v902_v55 = vpack.c.bf16 %v886_v47, %v886_v47 }
  0xc8   : > { %v614_v24 = vadd.f32 %v1600_v46, %v613_v23  ;;  %v576_v25 = vpop.f32.mrf.mxu0  ;;  %v1626_v6 = vpop.f32.mrf.mxu2 }
  0xc9   : > { %v775_v27 = vrot.slane %v774_v22, 4  ;;  %v577_v28 = vadd.f32 %v1600_v46, %v576_v25  ;;  %v670_v29 = vpop.f32.mrf.mxu1  ;;  %v954_v1 = vunpack.c.l.b16 %v902_v55 }
  0xca   : > { %v703_v32 = vadd.f32 %v702_v56, %v614_v24 }
  0xcb   : > { %v776_v33 = vadd.f32 %v775_v27, %v774_v22  ;;  %v666_v34 = vadd.f32 %v665_v2, %v577_v28 }
  0xcc   : > { %v754_v36 = vmax.f32 %v703_v32, 0.0 }
  0xcd   : > { %v777_v38 = vrot.slane %v776_v33, 2  ;;  %v739_v57 = vmax.f32 %v666_v34, 0.0 }
  0xce   : > { %v1618_v40 = vadd.f32 %v754_v36, %v753_v35 }
  0xcf   : > { %v778_v41 = vadd.f32 %v777_v38, %v776_v33  ;;  %v616_v42 = vpop.f32.mrf.mxu3 }
  0xd0   : > { %v617_v44 = vadd.f32 %v1600_v46, %v616_v42  ;;  %v578_v45 = vpop.f32.mrf.mxu0  ;;  %v1638_v26 = vpop.f32.mrf.mxu2 }
  0xd1   : > { %v779_v48 = vrot.slane %v778_v41, 1  ;;  %v579_v49 = vadd.f32 %v1600_v46, %v578_v45  ;;  %v672_v50 = vpop.f32.mrf.mxu1 }
  0xd2   : > { %v706_v51 = vadd.f32 %v705_v5, %v617_v44 }
  0xd3   : > { %v780_v53 = vadd.f32 %v779_v48, %v778_v41  ;;  %v668_v54 = vadd.f32 %v667_v13, %v579_v49  ;;  %v1398_v49 = vld [vmem:[%s1733_s3 + $0x20] sm:$0xff] }
  0xd4   : > { %v755_v12 = vmax.f32 %v706_v51, 0.0  ;;  %1044 = vmatpush.bf16.msrb.mxu2 %v1398_v49 }
  0xd5   : > { %v887_v56 = vmul.f32 %v1616_v39, %v780_v53  ;;  %v740_v58 = vmax.f32 %v668_v54, 0.0 }
  0xd7   : > { %v903_v59 = vpack.c.bf16 %v887_v56, %v887_v56  ;;  %v781_v60 = vadd.f32 %v740_v58, %v739_v57  ;;  %v618_v61 = vpop.f32.mrf.mxu3 }
  0xd8   : > { %v619_v63 = vadd.f32 %v1600_v46, %v618_v61  ;;  %v581_v0 = vpop.f32.mrf.mxu0  ;;  %v717_v44 = vpop.f32.mrf.mxu2 }
  0xd9   : > { %v955_v2 = vunpack.c.l.b16 %v903_v59  ;;  %v782_v3 = vrot.slane %v781_v60, 4  ;;  %v582_v4 = vadd.f32 %v1600_v46, %v581_v0  ;;  %v675_v5 = vpop.f32.mrf.mxu1 }
  0xda   : > { %v708_v8 = vadd.f32 %v707_v20, %v619_v63 }
  0xdb   : > { %v783_v9 = vadd.f32 %v782_v3, %v781_v60  ;;  %v671_v10 = vadd.f32 %v670_v29, %v582_v4  ;;  %v971_v11 = vsel %vm970_vm2, %v955_v2, %v954_v1 }
  0xdc   : > { %v756_v13 = vmax.f32 %v708_v8, 0.0 }
  0xdd   : > { %v784_v14 = vrot.slane %v783_v9, 2  ;;  %v741_v28 = vmax.f32 %v671_v10, 0.0 }
  0xde   : > { %v1632_v15 = vadd.f32 %v756_v13, %v755_v12 }
  0xdf   : > { %v785_v16 = vadd.f32 %v784_v14, %v783_v9  ;;  %v621_v17 = vpop.f32.mrf.mxu3  ;;  %v1397_v9 = vld [vmem:[%s1733_s3 + $0x18] sm:$0xff] }
  0xe0   : > { %v622_v18 = vadd.f32 %v1600_v46, %v621_v17  ;;  %v583_v19 = vpop.f32.mrf.mxu0  ;;  %v720_v0 = vpop.f32.mrf.mxu2  ;;  %1045 = vmatpush.bf16.msrb.mxu2 %v1397_v9 }
  0xe1   : > { %v786_v21 = vrot.slane %v785_v16, 1  ;;  %v584_v22 = vadd.f32 %v1600_v46, %v583_v19  ;;  %v677_v23 = vpop.f32.mrf.mxu1 }
  0xe2   : > { %v1636_v20 = vadd.f32 %v710_v43, %v622_v18 }
  0xe3   : > { %v787_v24 = vadd.f32 %v786_v21, %v785_v16  ;;  %v673_v25 = vadd.f32 %v672_v50, %v584_v22 }
  0xe5   : > { %v888_v27 = vmul.f32 %v1616_v39, %v787_v24  ;;  %v742_v29 = vmax.f32 %v673_v25, 0.0 }
  0xe7   : > { %v904_v30 = vpack.c.bf16 %v888_v27, %v888_v27  ;;  %v788_v31 = vadd.f32 %v742_v29, %v741_v28  ;;  %v623_v32 = vpop.f32.mrf.mxu3  ;;  %v1396_v27 = vld [vmem:[%s1733_s3 + $0x10] sm:$0xff] }
  0xe8   : > { %v586_v33 = vpop.f32.mrf.mxu0  ;;  %v722_v16 = vpop.f32.mrf.mxu2  ;;  %v624_v25 = vadd.f32 %v1600_v46, %v623_v32  ;;  %1046 = vmatpush.bf16.msrb.mxu2 %v1396_v27 }
  0xe9   : > { %v956_v34 = vunpack.c.l.b16 %v904_v30  ;;  %v789_v35 = vrot.slane %v788_v31, 4  ;;  %v1641_v36 = vpop.f32.mrf.mxu1  ;;  %v587_v43 = vadd.f32 %v1600_v46, %v586_v33 }
  0xea   : > { %v713_v32 = vadd.f32 %v1626_v6, %v624_v25  ;;  %v1394_v25 = vld [vmem:[%s1733_s3] sm:$0xff] }
  0xeb   : > { %v790_v38 = vadd.f32 %v789_v35, %v788_v31  ;;  %v973_v41 = vsel %vm972_vm3, %v956_v34, %v971_v11  ;;  %v676_v51 = vadd.f32 %v675_v5, %v587_v43 }
  0xed   : > { %v791_v42 = vrot.slane %v790_v38, 2  ;;  %v743_v58 = vmax.f32 %v676_v51, 0.0 }
  0xef   : > { %v792_v45 = vadd.f32 %v791_v42, %v790_v38  ;;  %v626_v47 = vpop.f32.mrf.mxu3 }
  0xf0   : > { %v588_v48 = vpop.f32.mrf.mxu0  ;;  %v725_v30 = vpop.f32.mrf.mxu2  ;;  %v627_v34 = vadd.f32 %v1600_v46, %v626_v47 }
  0xf1   : > { %v793_v50 = vrot.slane %v792_v45, 1  ;;  %v589_v53 = vadd.f32 %v1600_v46, %v588_v48  ;;  %v682_v54 = vpop.f32.mrf.mxu1 }
  0xf2   : > { %v716_v49 = vadd.f32 %v1638_v26, %v627_v34 }
  0xf3   : > { %v794_v55 = vadd.f32 %v793_v50, %v792_v45  ;;  %v678_v56 = vadd.f32 %v677_v23, %v589_v53  ;;  %v758_v53 = vmax.f32 %v713_v32, 0.0 }
  0xf5   : > { %v889_v57 = vmul.f32 %v1616_v39, %v794_v55  ;;  %v744_v59 = vmax.f32 %v678_v56, 0.0 }
  0xf7   : > { %v905_v60 = vpack.c.bf16 %v889_v57, %v889_v57  ;;  %v795_v61 = vadd.f32 %v744_v59, %v743_v58  ;;  %v628_v63 = vpop.f32.mrf.mxu3 }
  0xf8   : > { %v591_v1 = vpop.f32.mrf.mxu0  ;;  %v629_v28 = vadd.f32 %v1600_v46, %v628_v63  ;;  %v727_v63 = vpop.f32.mrf.mxu2 }
  0xf9   : > { %v957_v2 = vunpack.c.l.b16 %v905_v60  ;;  %v796_v3 = vrot.slane %v795_v61, 4  ;;  %v685_v4 = vpop.f32.mrf.mxu1  ;;  %v592_v35 = vadd.f32 %v1600_v46, %v591_v1  ;;  %v759_v60 = vmax.f32 %v716_v49, 0.0 }
  0xfa   : > { %v718_v38 = vadd.f32 %v717_v44, %v629_v28 }
  0xfb   : > { %v797_v5 = vadd.f32 %v796_v3, %v795_v61  ;;  %v975_v7 = vsel %vm974_vm4, %v957_v2, %v973_v41  ;;  %v681_v50 = vadd.f32 %v1641_v36, %v592_v35  ;;  %v831_v36 = vrot.slane %v1618_v40, 4 }
  0xfc   : > { %v760_v6 = vmax.f32 %v718_v38, 0.0 }
  0xfd   : > { %v798_v8 = vrot.slane %v797_v5, 2  ;;  %v745_v61 = vmax.f32 %v681_v50, 0.0 }
  0xfe   : > { %v851_v3 = vadd.f32 %v760_v6, %v759_v60 }
  0xff   : > { %v799_v10 = vadd.f32 %v798_v8, %v797_v5  ;;  %v631_v11 = vpop.f32.mrf.mxu3 }
 0x100   : > { %v593_v12 = vpop.f32.mrf.mxu0  ;;  %v632_v37 = vadd.f32 %v1600_v46, %v631_v11 }
 0x101   : > { %v800_v13 = vrot.slane %v799_v10, 1  ;;  %v687_v14 = vpop.f32.mrf.mxu1  ;;  %v594_v29 = vadd.f32 %v1600_v46, %v593_v12 }
 0x102   : > { %v721_v55 = vadd.f32 %v720_v0, %v632_v37  ;;  %v730_v37 = vpop.f32.mrf.mxu2 }
 0x103   : > { %v801_v17 = vadd.f32 %v800_v13, %v799_v10  ;;  %v683_v41 = vadd.f32 %v682_v54, %v594_v29  ;;  %v757_v54 = vmax.f32 %v1636_v20, 0.0  ;;  %v838_v10 = vrot.slane %v1632_v15, 4 }
 0x104   : > { %v761_v2 = vmax.f32 %v721_v55, 0.0  ;;  %v832_v13 = vadd.f32 %v831_v36, %v1618_v40  ;;  %v607_v29 = vadd.f32 %v1600_v46, %v1603_v52 }
 0x105   : > { %v890_v18 = vmul.f32 %v1616_v39, %v801_v17  ;;  %v746_v56 = vmax.f32 %v683_v41, 0.0  ;;  %v844_v1 = vadd.f32 %v758_v53, %v757_v54  ;;  %v1395_v17 = vld [vmem:[%s1733_s3 + $0x8] sm:$0xff]  ;;  %v839_v27 = vadd.f32 %v838_v10, %v1632_v15 }
 0x106   : > { %1047 = vmatpush.bf16.msrb.mxu2 %v1395_v17  ;;  %v609_v41 = vadd.f32 %v1600_v46, %v1606_v62 }
 0x107   : > { %v906_v19 = vpack.c.bf16 %v890_v18, %v890_v18  ;;  %v633_v21 = vpop.f32.mrf.mxu3  ;;  %v802_v5 = vadd.f32 %v746_v56, %v745_v61  ;;  %v852_v18 = vrot.slane %v851_v3, 4 }
 0x108   : > { %v596_v22 = vpop.f32.mrf.mxu0  ;;  %v634_v33 = vadd.f32 %v1600_v46, %v633_v21 }
 0x109   : > { %v958_v23 = vunpack.c.l.b16 %v906_v19  ;;  %v1658_v24 = vpop.f32.mrf.mxu1  ;;  %v597_v42 = vadd.f32 %v1600_v46, %v596_v22  ;;  %v803_v19 = vrot.slane %v802_v5, 4  ;;  %v853_v35 = vadd.f32 %v852_v18, %v851_v3 }
 0x10a   : > { %v723_v45 = vadd.f32 %v722_v16, %v634_v33  ;;  %1048 = vmatpush.bf16.msrb.mxu2 %v1394_v25 }
 0x10b   : > { %v1667_v31 = vsel %vm976_vm5, %v958_v23, %v975_v7  ;;  %v686_v57 = vadd.f32 %v685_v4, %v597_v42  ;;  %v804_v32 = vadd.f32 %v803_v19, %v802_v5  ;;  %v854_v56 = vrot.slane %v853_v35, 2 }
 0x10c   : > { %v762_v58 = vmax.f32 %v723_v45, 0.0 }
 0x10d   : > { %v747_v0 = vmax.f32 %v686_v57, 0.0  ;;  %v805_v57 = vrot.slane %v804_v32, 2  ;;  %v855_v3 = vadd.f32 %v854_v56, %v853_v35 }
 0x10e   : > { %v858_v8 = vadd.f32 %v762_v58, %v761_v2 }
 0x10f   : > { %v636_v43 = vpop.f32.mrf.mxu3  ;;  %v806_v5 = vadd.f32 %v805_v57, %v804_v32  ;;  %v856_v19 = vrot.slane %v855_v3, 1 }
 0x110   : > { %v598_v48 = vpop.f32.mrf.mxu0  ;;  %v637_v59 = vadd.f32 %v1600_v46, %v636_v43  ;;  %v859_v21 = vrot.slane %v858_v8, 4 }
 0x111   : > { %v599_v51 = vadd.f32 %v1600_v46, %v598_v48  ;;  %v1678_v47 = vpop.f32.mrf.mxu1  ;;  %v840_v48 = vrot.slane %v839_v27, 2 }
 0x112   : > { %v726_v4 = vadd.f32 %v725_v30, %v637_v59  ;;  %v833_v30 = vrot.slane %v832_v13, 2  ;;  %v860_v42 = vadd.f32 %v859_v21, %v858_v8  ;;  %v807_v21 = vrot.slane %v806_v5, 1 }
 0x113   : > { %v688_v44 = vadd.f32 %v687_v14, %v599_v51  ;;  %v845_v14 = vrot.slane %v844_v1, 4  ;;  %v841_v61 = vadd.f32 %v840_v48, %v839_v27 }
 0x114   : > { %v763_v22 = vmax.f32 %v726_v4, 0.0  ;;  %v834_v53 = vadd.f32 %v833_v30, %v832_v13  ;;  %v861_v54 = vrot.slane %v860_v42, 2  ;;  %v732_v13 = vpop.f32.mrf.mxu2 }
 0x115   : > { %v748_v26 = vmax.f32 %v688_v44, 0.0  ;;  %v846_v33 = vadd.f32 %v845_v14, %v844_v1  ;;  %v842_v10 = vrot.slane %v841_v61, 1 }
 0x116   : > { %v835_v36 = vrot.slane %v834_v53, 1  ;;  %v862_v4 = vadd.f32 %v861_v54, %v860_v42  ;;  %v808_v42 = vadd.f32 %v807_v21, %v806_v5 }
 0x117   : > { %v638_v7 = vpop.f32.mrf.mxu3  ;;  %v809_v11 = vadd.f32 %v748_v26, %v747_v0  ;;  %v847_v55 = vrot.slane %v846_v33, 2 }
 0x118   : > { %v639_v9 = vadd.f32 %v1600_v46, %v638_v7  ;;  %v601_v20 = vpop.f32.mrf.mxu0  ;;  %v836_v14 = vadd.f32 %v835_v36, %v834_v53  ;;  %v863_v25 = vrot.slane %v862_v4, 1 }
 0x119   : > { %v695_v12 = vpop.f32.mrf.mxu1  ;;  %v810_v28 = vrot.slane %v809_v11, 4  ;;  %v602_v40 = vadd.f32 %v1600_v46, %v601_v20  ;;  %v848_v1 = vadd.f32 %v847_v55, %v846_v33 }
 0x11a   : > { %v728_v16 = vadd.f32 %v727_v63, %v639_v9  ;;  %v696_v45 = vadd.f32 %v695_v12, %v607_v29  ;;  %v843_v29 = vadd.f32 %v842_v10, %v841_v61  ;;  %v895_v32 = vmul.f32 %v1616_v39, %v836_v14 }
 0x11b   : > { %v811_v49 = vadd.f32 %v810_v28, %v809_v11  ;;  %v691_v50 = vadd.f32 %v1658_v24, %v602_v40 }
 0x11c   : > { %v764_v23 = vmax.f32 %v728_v16, 0.0  ;;  %v751_v58 = vmax.f32 %v696_v45, 0.0  ;;  %v849_v16 = vrot.slane %v848_v1, 1  ;;  %v896_v48 = vmul.f32 %v1616_v39, %v843_v29 }
 0x11d   : > { %v812_v26 = vrot.slane %v811_v49, 2  ;;  %v749_v63 = vmax.f32 %v691_v50, 0.0  ;;  %v911_v55 = vpack.c.bf16 %v895_v32, %v895_v32 }
 0x11e   : > { %v865_v34 = vadd.f32 %v764_v23, %v763_v22 }
 0x11f   : > { %v641_v38 = vpop.f32.mrf.mxu3  ;;  %v813_v11 = vadd.f32 %v812_v26, %v811_v49  ;;  %v963_v36 = vunpack.c.l.b16 %v911_v55 }
 0x120   : > { %v866_v43 = vrot.slane %v865_v34, 4  ;;  %v603_v15 = vpop.f32.mrf.mxu0  ;;  %v642_v59 = vadd.f32 %v1600_v46, %v641_v38 }
 0x121   : > { %v604_v52 = vadd.f32 %v1600_v46, %v603_v15  ;;  %v697_v51 = vpop.f32.mrf.mxu1  ;;  %v814_v30 = vrot.slane %v813_v11, 1 }
 0x122   : > { %v698_v6 = vadd.f32 %v697_v51, %v609_v41  ;;  %v867_v44 = vadd.f32 %v866_v43, %v865_v34  ;;  %v731_v9 = vadd.f32 %v730_v37, %v642_v59  ;;  %v857_v37 = vadd.f32 %v856_v19, %v855_v3 }
 0x123   : > { %v693_v62 = vadd.f32 %v1678_v47, %v604_v52  ;;  %v864_v43 = vadd.f32 %v863_v25, %v862_v4  ;;  %v815_v49 = vadd.f32 %v814_v30, %v813_v11  ;;  %v912_v59 = vpack.c.bf16 %v896_v48, %v896_v48 }
 0x124   : > { %v752_v60 = vmax.f32 %v698_v6, 0.0  ;;  %v868_v0 = vrot.slane %v867_v44, 2  ;;  %v765_v27 = vmax.f32 %v731_v9, 0.0  ;;  %v898_v6 = vmul.f32 %v1616_v39, %v857_v37 }
 0x125   : > { %v750_v24 = vmax.f32 %v693_v62, 0.0  ;;  %v899_v62 = vmul.f32 %v1616_v39, %v864_v43 }
 0x126   : > { %v823_v2 = vadd.f32 %v752_v60, %v751_v58  ;;  %v869_v22 = vadd.f32 %v868_v0, %v867_v44  ;;  %v891_v44 = vmul.f32 %v1616_v39, %v808_v42  ;;  %v892_v60 = vmul.f32 %v1616_v39, %v815_v49 }
 0x127   : > { %v816_v7 = vadd.f32 %v750_v24, %v749_v63  ;;  %v643_v8 = vpop.f32.mrf.mxu3  ;;  %v915_v5 = vpack.c.bf16 %v899_v62, %v899_v62 }
 0x128   : > { %v824_v47 = vrot.slane %v823_v2, 4  ;;  %v644_v20 = vadd.f32 %v1600_v46, %v643_v8  ;;  %v850_v46 = vadd.f32 %v849_v16, %v848_v1  ;;  %v870_v38 = vrot.slane %v869_v22, 1 }
 0x129   : > { %v817_v12 = vrot.slane %v816_v7, 4  ;;  %v914_v1 = vpack.c.bf16 %v898_v6, %v898_v6  ;;  %v907_v3 = vpack.c.bf16 %v891_v44, %v891_v44  ;;  %v964_v8 = vunpack.c.l.b16 %v912_v59 }
 0x12a   : > { %v825_v17 = vadd.f32 %v824_v47, %v823_v2  ;;  %v733_v18 = vadd.f32 %v732_v13, %v644_v20  ;;  %v897_v52 = vmul.f32 %v1616_v39, %v850_v46  ;;  %v871_v56 = vadd.f32 %v870_v38, %v869_v22 }
 0x12b   : > { %v818_v23 = vadd.f32 %v817_v12, %v816_v7  ;;  %v908_v4 = vpack.c.bf16 %v892_v60, %v892_v60  ;;  %v966_v11 = vunpack.c.l.b16 %v914_v1  ;;  %v959_v16 = vunpack.c.l.b16 %v907_v3 }
 0x12c   : > { %v826_v28 = vrot.slane %v825_v17, 2  ;;  %v766_v40 = vmax.f32 %v733_v18, 0.0  ;;  %v913_v61 = vpack.c.bf16 %v897_v52, %v897_v52  ;;  %v900_v2 = vmul.f32 %v1616_v39, %v871_v56 }
 0x12d   : > { %v819_v33 = vrot.slane %v818_v23, 2  ;;  %v960_v19 = vunpack.c.l.b16 %v908_v4 }
 0x12e   : > { %v827_v34 = vadd.f32 %v826_v28, %v825_v17  ;;  %v872_v35 = vadd.f32 %v766_v40, %v765_v27  ;;  %v965_v9 = vunpack.c.l.b16 %v913_v61  ;;  %v916_v12 = vpack.c.bf16 %v900_v2, %v900_v2 }
 0x12f   : > { %v820_v41 = vadd.f32 %v819_v33, %v818_v23  ;;  %v967_v17 = vunpack.c.l.b16 %v915_v5  ;;  %v979_v40 = vsel %vm978_vm6, %v959_v16, %v1667_v31 }
 0x130   : > { %v828_v45 = vrot.slane %v827_v34, 1  ;;  %v873_v15 = vrot.slane %v872_v35, 4  ;;  %v968_v27 = vunpack.c.l.b16 %v916_v12  ;;  %v981_v29 = vsel %vm980_vm7, %v960_v19, %v979_v40 }
 0x131   : > { %v821_v50 = vrot.slane %v820_v41, 1 }
 0x132   : > { %v829_v51 = vadd.f32 %v828_v45, %v827_v34  ;;  %v874_v53 = vadd.f32 %v873_v15, %v872_v35  ;;  %v1424_v34 = vld [vmem:[%s1734_s4] ss:$0 sm:$0xff] }
 0x133   : > { %v822_v57 = vadd.f32 %v821_v50, %v820_v41 }
 0x134   : > { %v894_v54 = vmul.f32 %v1616_v39, %v829_v51  ;;  %v875_v58 = vrot.slane %v874_v53, 2 }
 0x135   : > { %v893_v24 = vmul.f32 %v1616_v39, %v822_v57 }
 0x136   : > { %v910_v26 = vpack.c.bf16 %v894_v54, %v894_v54  ;;  %v876_v63 = vadd.f32 %v875_v58, %v874_v53 }
 0x137   : > { %v909_v10 = vpack.c.bf16 %v893_v24, %v893_v24 }
 0x138   : > { %v962_v0 = vunpack.c.l.b16 %v910_v26  ;;  %v877_v7 = vrot.slane %v876_v63, 1 }
 0x139   : > { %v961_v23 = vunpack.c.l.b16 %v909_v10 }
 0x13a   : > { %v984_v47 = vsel %vm970_vm2, %v963_v36, %v962_v0  ;;  %v878_v20 = vadd.f32 %v877_v7, %v876_v63 }
 0x13b   : > { %v985_v13 = vsel %vm972_vm3, %v964_v8, %v984_v47  ;;  %v983_v30 = vsel %vm982_vm8, %v961_v23, %v981_v29 }
 0x13c   : > { %v901_v14 = vmul.f32 %v1616_v39, %v878_v20  ;;  %v986_v18 = vsel %vm974_vm4, %v965_v9, %v985_v13 }
 0x13d   : > { %v987_v21 = vsel %vm976_vm5, %v966_v11, %v986_v18 }
 0x13e   : > { %v917_v22 = vpack.c.bf16 %v901_v14, %v901_v14  ;;  %v988_v25 = vsel %vm978_vm6, %v967_v17, %v987_v21 }
 0x13f   : > { %v989_v39 = vsel %vm980_vm7, %v968_v27, %v988_v25 }
 0x140   : > { %v969_v28 = vunpack.c.l.b16 %v917_v22 }
 0x142   : > { %v990_v33 = vsel %vm982_vm8, %v969_v28, %v989_v39 }
 0x143   : > { %v991_v46 = vpack.c.b16 %v990_v33, %v983_v30 }
 0x145   : > { %1049 = vmatmul.bf16.vlgmr.msrb.gmra.mxu2 %v991_v46 }
 0x1c8   : > { %v1050_v31 = vpop.f32.mrf.mxu2 }
 0x1c9   : > { %v1051_v35 = vadd.f32 %v1424_v34, %v1050_v31 }
 0x1cb   : > { %1055 = vst [vmem:[%s229_s27] sm:$0xff] %v1051_v35 }
 0x1d0   : > { %v1052_v32 = vpop.f32.mrf.mxu2 }
 0x1d1   : > { %v1053_v37 = vadd.f32 %v1424_v34, %v1052_v32 }
 0x1d3   : > { %1056 = vst [vmem:[%s229_s27 + $0x8] sm:$0xff] %v1053_v37 }
 0x1d4 PF: > { %s15_s18 = sadd.s32 1, %s1433_s18  }
 0x1d5   : > { %p12_p5 = scmp.ge.s32.totalorder %s15_s18, 4  }
 0x1d7   :  { %14 = sbr.rel (!%p12_p5) target bundleno = 1 (0x1), region = 70 }

</bundles_post_ra>
